<compile_context>
chip_gen: v5e
topology: v5e:2x2
jax: 0.10.0
libtpu: 0.0.40
codegen_flags: <defaults>
</compile_context>

<pallas_src>
import functools
import math

import jax
import jax.numpy as jnp
from jax.experimental import pallas as pl
from jax.experimental.pallas import tpu as pltpu


def _round_up(x, m):
    return ((x + m - 1) // m) * m


# ----------------------------- Pallas kernel --------------------------------

def _matmul_kernel(*refs, relu, has_res, multi_k):
    """bf16 MXU matmul with fused bias (+residual) (+ReLU) epilogue.

    multi_k=False: whole contraction in one grid step -> no scratch
    accumulator; the result goes straight to o_ref (saves a (tm,tn) f32 VMEM
    buffer and a vreg<->VMEM round trip).
    multi_k=True : K split over grid axis 2 -> f32 scratch accumulator with
    pl.when init/finalize.
    """
    if not multi_k:
        if has_res:
            x_ref, w_ref, b_ref, r_ref, o_ref = refs
        else:
            x_ref, w_ref, b_ref, o_ref = refs
            r_ref = None
        acc = jnp.dot(x_ref[...], w_ref[...],
                      preferred_element_type=jnp.float32)
        acc = acc + b_ref[...]                    # (1, tn) broadcasts over tm
        if has_res:
            acc = acc + r_ref[...].astype(jnp.float32)
        if relu:
            acc = jnp.maximum(acc, 0.0)
        o_ref[...] = acc.astype(o_ref.dtype)
        return

    if has_res:
        x_ref, w_ref, b_ref, r_ref, o_ref, acc_ref = refs
    else:
        x_ref, w_ref, b_ref, o_ref, acc_ref = refs
        r_ref = None

    @pl.when(pl.program_id(2) == 0)
    def _():
        acc_ref[...] = jnp.zeros_like(acc_ref)

    acc_ref[...] += jnp.dot(x_ref[...], w_ref[...],
                            preferred_element_type=jnp.float32)

    @pl.when(pl.program_id(2) == pl.num_programs(2) - 1)
    def _():
        acc = acc_ref[...] + b_ref[...]
        if has_res:
            acc = acc + r_ref[...].astype(jnp.float32)
        if relu:
            acc = jnp.maximum(acc, 0.0)
        o_ref[...] = acc.astype(o_ref.dtype)


def matmul_fused(x, w, b, residual=None, relu=False, out_dtype=jnp.bfloat16):
    """(M,K) @ (K,N) + b [+ residual] [ReLU].  N must be a multiple of 128
    (weights are channel-padded at init, so every store is lane-dense)."""
    M, K = x.shape
    Kw, N = w.shape
    assert K == Kw, (K, Kw)
    assert N % 128 == 0, N

    # ---- tile / grid selection: grid economy + lane density + 2-core balance
    tm = 256 if M >= 256 else _round_up(M, 16)      # 16 = bf16 sublane pack
    M_pad = _round_up(M, tm)
    K_pad = _round_up(K, 128)
    if N >= 256 and (N // 2) % 128 == 0:
        tn = N // 2            # j == 2 keeps both v7x TensorCores busy
    else:
        tn = 128
    # Cap tk so a double-buffered (tk, tn) bf16 weight tile stays <= ~8 MiB;
    # for this net K_pad always fits, so the K grid collapses to 1 step.
    tk_cap = max(128, ((2 * 1024 * 1024) // tn) // 128 * 128)
    if K_pad <= tk_cap:
        tk = K_pad
    else:
        tk = 128
        for cand in (4096, 2048, 1024, 512, 256):
            if cand <= tk_cap and K_pad % cand == 0:
                tk = cand
                break
    nk = K_pad // tk
    grid = (M_pad // tm, N // tn, nk)
    multi_k = nk > 1

    x = x.astype(jnp.bfloat16)
    w = w.astype(jnp.bfloat16)
    if (M_pad, K_pad) != (M, K):
        x = jnp.pad(x, ((0, M_pad - M), (0, K_pad - K)))
    if K_pad != K:
        w = jnp.pad(w, ((0, K_pad - K), (0, 0)))
    b2 = b.reshape(1, N).astype(jnp.float32)

    if nk >= 4:     # long K pipelines: buffer 3 deep (plenty of VMEM on v6e)
        x_spec = pl.BlockSpec((tm, tk), lambda i, j, k: (i, k),
                              pipeline_mode=pl.Buffered(3))
        w_spec = pl.BlockSpec((tk, tn), lambda i, j, k: (k, j),
                              pipeline_mode=pl.Buffered(3))
    else:
        x_spec = pl.BlockSpec((tm, tk), lambda i, j, k: (i, k))
        w_spec = pl.BlockSpec((tk, tn), lambda i, j, k: (k, j))
    in_specs = [x_spec, w_spec, pl.BlockSpec((1, tn), lambda i, j, k: (0, j))]
    args = [x, w, b2]

    has_res = residual is not None
    if has_res:
        r = residual.astype(jnp.bfloat16)
        if M_pad != M:
            r = jnp.pad(r, ((0, M_pad - M), (0, 0)))
        in_specs.append(pl.BlockSpec((tm, tn), lambda i, j, k: (i, j)))
        args.append(r)

    out_bytes = M_pad * N * jnp.dtype(out_dtype).itemsize
    bytes_accessed = (M_pad * K_pad + K_pad * N) * 2 + out_bytes
    if has_res:
        bytes_accessed += M_pad * N * 2
    cost = pl.CostEstimate(flops=2 * M_pad * N * K_pad, transcendentals=0,
                           bytes_accessed=int(bytes_accessed))

    out = pl.pallas_call(
        functools.partial(_matmul_kernel, relu=relu, has_res=has_res,
                          multi_k=multi_k),
        out_shape=jax.ShapeDtypeStruct((M_pad, N), out_dtype),
        grid=grid,
        in_specs=in_specs,
        out_specs=pl.BlockSpec((tm, tn), lambda i, j, k: (i, j)),
        scratch_shapes=([pltpu.VMEM((tm, tn), jnp.float32)] if multi_k else []),
        compiler_params=pltpu.CompilerParams(
            dimension_semantics=("parallel", "parallel", "arbitrary")),
        cost_estimate=cost,
    )(*args)

    if M_pad != M:
        out = out[:M]
    return out


# ----------------------- JAX glue (im2col / pooling) ------------------------

def im2col(x, k, stride, pad):
    """x: NHWC -> (N*Ho*Wo, k*k*C) patch matrix, columns ordered (dy, dx, c)."""
    N, H, W, C = x.shape
    xp = jnp.pad(x, ((0, 0), (pad, pad), (pad, pad), (0, 0)))
    Ho = (H + 2 * pad - k) // stride + 1
    Wo = (W + 2 * pad - k) // stride + 1
    cols = []
    for dy in range(k):
        for dx in range(k):
            sl = jax.lax.slice(
                xp,
                (0, dy, dx, 0),
                (N, dy + (Ho - 1) * stride + 1, dx + (Wo - 1) * stride + 1, C),
                (1, stride, stride, 1))
            cols.append(sl)
    cols = jnp.concatenate(cols, axis=-1)          # (N, Ho, Wo, k*k*C)
    return cols.reshape(N * Ho * Wo, k * k * C), Ho, Wo


def conv_bn(x, p, stride, relu, residual=None):
    """Conv(kxk, stride, pad=k//2) + folded BN (+ residual) (+ ReLU)."""
    k = p['k']
    pad = k // 2
    N = x.shape[0]
    cols, Ho, Wo = im2col(x, k, stride, pad)
    res2d = None
    if residual is not None:
        res2d = residual.reshape(N * Ho * Wo, residual.shape[-1])
    out = matmul_fused(cols, p['w'], p['b'], residual=res2d, relu=relu,
                       out_dtype=jnp.bfloat16)
    return out.reshape(N, Ho, Wo, -1)


def maxpool3x3s2(x):
    """MaxPool2d(3, stride=2, padding=1), NHWC.

    Folds jnp.maximum over the 9 shifted strided slices; XLA fuses this into a
    single pass over the padded input -- no (M, 9, C) patch materialization.
    """
    N, H, W, C = x.shape
    # TODO(synk): -inf padding assumes a floating-point activation dtype.
    xp = jnp.pad(x, ((0, 0), (1, 1), (1, 1), (0, 0)),
                 constant_values=-jnp.inf)
    Ho = (H + 2 - 3) // 2 + 1
    Wo = (W + 2 - 3) // 2 + 1
    out = None
    for dy in range(3):
        for dx in range(3):
            sl = jax.lax.slice(
                xp,
                (0, dy, dx, 0),
                (N, dy + (Ho - 1) * 2 + 1, dx + (Wo - 1) * 2 + 1, C),
                (1, 2, 2, 1))
            out = sl if out is None else jnp.maximum(out, sl)
    return out


# ----------------------- deterministic parameter init -----------------------

def init_conv_bn(key, cin, cout, k, cin_act=None, cout_pad=None):
    """Conv+BN folded weights, packed for the im2col matmul.

    cin      : real input channels of the conv.
    cin_act  : channel count of the activation it will actually see (>= cin;
               extra channels are zero-padded lanes and get zero weights).
    cout_pad : padded output channel count (multiple of 128) -> lane-dense N.
    """
    cin_act = cin if cin_act is None else cin_act
    cout_pad = _round_up(cout, 128) if cout_pad is None else cout_pad
    k1, k2, k3, k4, k5 = jax.random.split(key, 5)
    fan = cin * k * k
    w = jax.random.normal(k1, (cout, cin, k, k), jnp.float32) / math.sqrt(fan)
    gamma = 1.0 + 0.1 * jax.random.normal(k2, (cout,), jnp.float32)
    beta = 0.1 * jax.random.normal(k3, (cout,), jnp.float32)
    mean = 0.1 * jax.random.normal(k4, (cout,), jnp.float32)
    var = 0.5 + jnp.abs(jax.random.normal(k5, (cout,), jnp.float32))
    # Fold inference-mode BatchNorm: y = scale*conv(x) + bias
    scale = gamma / jnp.sqrt(var + 1e-5)
    wf = w * scale[:, None, None, None]
    bias = beta - mean * scale
    # Embed into the channel-padded weight (zero rows/cols for padded channels)
    w_full = jnp.zeros((cout_pad, cin_act, k, k), jnp.float32)
    w_full = w_full.at[:cout, :cin].set(wf)
    b_full = jnp.zeros((cout_pad,), jnp.float32).at[:cout].set(bias)
    # (Cout, Cin, kh, kw) -> (kh, kw, Cin, Cout) -> (kh*kw*Cin, Cout); matches
    # the (dy, dx, c) column ordering produced by im2col.  bf16 for the MXU,
    # bias kept f32 for the epilogue.
    w_mat = jnp.transpose(w_full, (2, 3, 1, 0)).reshape(k * k * cin_act,
                                                        cout_pad)
    return {'w': w_mat.astype(jnp.bfloat16), 'b': b_full, 'k': k}


def init_resnet34_params(key, num_classes):
    keys = iter(jax.random.split(key, 128))
    cp = lambda c: _round_up(c, 128)

    params = {'conv1': init_conv_bn(next(keys), 3, 64, 7, cin_act=3)}
    layers = []
    cin, cin_act = 64, cp(64)           # stem output is padded to 128 channels
    for cout, nblocks, stride in [(64, 3, 1), (128, 4, 2),
                                  (256, 6, 2), (512, 3, 2)]:
        cout_act = cp(cout)
        blocks = []
        for b in range(nblocks):
            s = stride if b == 0 else 1
            blocks.append({
                'conv1': init_conv_bn(next(keys), cin, cout, 3,
                                      cin_act=cin_act),
                'conv2': init_conv_bn(next(keys), cout, cout, 3,
                                      cin_act=cout_act),
                'down': (init_conv_bn(next(keys), cin, cout, 1,
                                      cin_act=cin_act)
                         if (s != 1 or cin != cout) else None),
                'stride': s,
            })
            cin, cin_act = cout, cout_act
        layers.append(blocks)
    params['layers'] = layers

    # FC head: Linear(512, num_classes); pad N to 128 for lane-dense stores.
    kf1, kf2 = jax.random.split(next(keys))
    nc_pad = cp(num_classes)
    wfc = (jax.random.normal(kf1, (512, num_classes), jnp.float32)
           / math.sqrt(512.0))
    bfc = 0.01 * jax.random.normal(kf2, (num_classes,), jnp.float32)
    params['fc_w'] = (jnp.zeros((512, nc_pad), jnp.float32)
                      .at[:, :num_classes].set(wfc)).astype(jnp.bfloat16)
    params['fc_b'] = jnp.zeros((nc_pad,), jnp.float32).at[:num_classes].set(bfc)
    params['num_classes'] = num_classes
    return params


# ----------------------- Model_Rotation forward -----------------------------

def model_rotation_forward(params, x_nchw):
    # PyTorch NCHW input -> NHWC bf16 for the Pallas kernels.
    x = jnp.transpose(x_nchw, (0, 2, 3, 1)).astype(jnp.bfloat16)

    # stem: conv7x7/2 + BN + ReLU (output channel-padded to 128), maxpool3x3/2
    x = conv_bn(x, params['conv1'], stride=2, relu=True)
    x = maxpool3x3s2(x)

    # resnet-34 basic blocks; residual add + ReLU fused into conv2's epilogue.
    for blocks in params['layers']:
        for blk in blocks:
            identity = x
            if blk['down'] is not None:
                identity = conv_bn(x, blk['down'], stride=blk['stride'],
                                   relu=False)
            out = conv_bn(x, blk['conv1'], stride=blk['stride'], relu=True)
            x = conv_bn(out, blk['conv2'], stride=1, relu=True,
                        residual=identity)

    # AdaptiveAvgPool2d((1,1)) + .squeeze(); spatial is 1x1 here, so a Pallas
    # launch would be pure overhead -> jnp.mean (per perf review).
    feat = jnp.mean(x.astype(jnp.float32), axis=(1, 2))      # (N, 512)

    # fc1: Linear(512, num_classes) on the Pallas MXU kernel (N padded to 128).
    # NOTE: head runs in bf16 like the backbone; keep it f32 if bitwise parity
    # with a pure-f32 PyTorch head is required.
    logits = matmul_fused(feat, params['fc_w'], params['fc_b'],
                          relu=False, out_dtype=jnp.float32)
    return logits[:, :params['num_classes']]


if __name__ == "__main__":
    num_classes = 10
    key = jax.random.PRNGKey(0)
    kp, kx = jax.random.split(key)
    params = init_resnet34_params(kp, num_classes)

    # small input consistent with a 3-channel image model (NCHW, PyTorch style)
    x = jax.random.normal(kx, (2, 3, 32, 32), jnp.float32)

    out = model_rotation_forward(params, x)
    out = jax.block_until_ready(out)

    assert out.shape == (2, num_classes), out.shape
    assert bool(jnp.all(jnp.isfinite(out)))
    print("KERNEL_OK")
</pallas_src>

<mosaic_0001>
module attributes {stable_mosaic.version = 11 : i64} {
  func.func @_matmul_kernel(%arg0: i32, %arg1: i32, %arg2: i32, %arg3: memref<256x256xbf16, #tpu.memory_space<vmem>>, %arg4: memref<256x128xbf16, #tpu.memory_space<vmem>>, %arg5: memref<1x128xf32, #tpu.memory_space<vmem>>, %arg6: memref<256x128xbf16, #tpu.memory_space<vmem>>) attributes {dimension_semantics = [#tpu.dimension_semantics<parallel>, #tpu.dimension_semantics<parallel>, #tpu.dimension_semantics<arbitrary>], iteration_bounds = array<i64: 2, 1, 1>, scalar_prefetch = 0 : i64, scratch_operands = 0 : i64, tpu.core_type = #tpu.core_type<tc>, window_params = [{transform_indices = @transform_0, window_bounds = array<i64: 256, 256>}, {transform_indices = @transform_1, window_bounds = array<i64: 256, 128>}, {transform_indices = @transform_2, window_bounds = array<i64: 1, 128>}, {transform_indices = @transform_3, window_bounds = array<i64: 256, 128>}]} {
    %c0 = arith.constant 0 : index
    %c0_0 = arith.constant 0 : index
    %0 = vector.load %arg3[%c0, %c0_0] : memref<256x256xbf16, #tpu.memory_space<vmem>>, vector<256x256xbf16>
    %c0_1 = arith.constant 0 : index
    %c0_2 = arith.constant 0 : index
    %1 = vector.load %arg4[%c0_1, %c0_2] : memref<256x128xbf16, #tpu.memory_space<vmem>>, vector<256x128xbf16>
    %cst = arith.constant dense<0.000000e+00> : vector<256x128xf32>
    %2 = tpu.matmul %0, %1, %cst {dimension_numbers = #tpu.dot_dimension_numbers<[1], [0], [0], [1], [0, 0, 1, 1], [], []>} : vector<256x256xbf16>, vector<256x128xbf16>, vector<256x128xf32> -> vector<256x128xf32>
    %c0_3 = arith.constant 0 : index
    %c0_4 = arith.constant 0 : index
    %3 = vector.load %arg5[%c0_3, %c0_4] : memref<1x128xf32, #tpu.memory_space<vmem>>, vector<1x128xf32>
    %4 = vector.broadcast %3 : vector<1x128xf32> to vector<256x128xf32>
    %5 = arith.addf %2, %4 : vector<256x128xf32>
    %cst_5 = arith.constant 0.000000e+00 : f32
    %6 = vector.broadcast %cst_5 : f32 to vector<256x128xf32>
    %7 = arith.maximumf %5, %6 : vector<256x128xf32>
    %8 = arith.truncf %7 : vector<256x128xf32> to vector<256x128xbf16>
    %c0_6 = arith.constant 0 : index
    %c0_7 = arith.constant 0 : index
    %9 = vector.load %arg6[%c0_6, %c0_7] : memref<256x128xbf16, #tpu.memory_space<vmem>>, vector<256x128xbf16>
    tpu.vector_store %arg6[%c0_6, %c0_7], %8 {strides = array<i32>} : memref<256x128xbf16, #tpu.memory_space<vmem>>, vector<256x128xbf16>,
    return
  }
  func.func @transform_0(%arg0: i32, %arg1: i32, %arg2: i32) -> (i32, i32) {
    %c0_i32 = arith.constant 0 : i32
    return %arg0, %arg2 : i32, i32
  }
  func.func @transform_1(%arg0: i32, %arg1: i32, %arg2: i32) -> (i32, i32) {
    %c0_i32 = arith.constant 0 : i32
    return %arg2, %arg1 : i32, i32
  }
  func.func @transform_2(%arg0: i32, %arg1: i32, %arg2: i32) -> (i32, i32) {
    %c0_i32 = arith.constant 0 : i32
    %c0_i32_0 = arith.constant 0 : i32
    return %c0_i32, %arg1 : i32, i32
  }
  func.func @transform_3(%arg0: i32, %arg1: i32, %arg2: i32) -> (i32, i32) {
    %c0_i32 = arith.constant 0 : i32
    return %arg0, %arg1 : i32, i32
  }
}

</mosaic_0001>

<bundles_post_ra>
// kernel: tpu_custom_call.1
= control target key start
LH: loop header
LB: loop body
LE: loop exit
PB: predicated region body
PF: predicated region fallthrough
CT: control target
= control target key end

     0   :  { %s1893_s0 = inlined_call_operand.hbm [shape: bf16[512,256], index: 0, kind: input, shape index: {}]   ;;  %s1894_s1 = inlined_call_operand.hbm [shape: bf16[256,128], index: 1, kind: input, shape index: {}]   ;;  %s1895_s2 = inlined_call_operand.vmem [shape: f32[1,128], index: 2, kind: input, shape index: {}]   ;;  %s1896_s3 = inlined_call_operand.hbm [shape: bf16[512,128], index: 3, kind: output, shape index: {}]  }
   0x1   :  { %1897 = sst [smem:[#allocation11_spill]] %s1894_s1 }
   0x2   :  { %8 = vsyncpa [#allocation3], 0 }
   0x3   :  { %10 = vsyncpa [#allocation3 + $0x1], 0 }
   0x4   :  { %11 = vsyncpa [#allocation6], 0 }
   0x5   :  { %12 = vsyncpa [#allocation4], 0 }
   0x6   :  { %14 = vsyncpa [#allocation4 + $0x1], 0  ;;  %s1621_s12 = smov 0   ;;  %s1623_s13 = smov 0  }
   0x7   :  { %s1625_s14 = smov 0   ;;  %s1627_s15 = smov 0  }
   0x8   :  { %s1629_s16 = smov 0   ;;  %s1631_s17 = smov 0  }
   0x9 LB: > { %s993_s18 = sadd.s32 4294967295, %s1592_s17   ;;  %s994_s19 = sadd.s32 4294967294, %s1592_s17   ;;  %s1592_s17 = sphi %s1631_s17, %s20_s17   ;;  %s1588_s16 = sphi %s1629_s16, %s1910_s16   ;;  %s1584_s15 = sphi %s1627_s15, %s1909_s15   ;;  %s1580_s14 = sphi %s1625_s14, %s1908_s14   ;;  %s1576_s13 = sphi %s1623_s13, %s1907_s13   ;;  %s1572_s12 = sphi %s1621_s12, %s1906_s12  }
   0xa   : > { %p61_p0 = scmp.ne.s32.totalorder %s1576_s13, %s1572_s12  ;;  %p1655_p1 = scmp.eq.s32.totalorder %s993_s18, 0 }
   0xb   : > { %p1659_p2 = scmp.eq.s32.totalorder %s993_s18, 1  ;;  %p147_p3 = scmp.eq.s32.totalorder %s994_s19, 1 }
   0xc   : > { %p1665_p4 = por %p1655_p1, %p61_p0  ;;  %p995_p5 = scmp.ge.s32.totalorder %s1592_s17, 1 }
   0xd   : > { %p1670_p6 = por %p147_p3, %p61_p0  ;;  %p154_p7 = scmp.lt.s32.totalorder %s1592_s17, 3 }
   0xe   : > { %s1902_s1 = sld [smem:[#allocation11_spill]]  ;;  %s1594_s28 = smov [#allocation5]  }
   0xf   : > { %p1678_p8 = pnand %p995_p5, %p154_p7  ;;  %s171_s29 = sshll.u32 %s1594_s28, 4  ;;  %s172_s29 = int_to_ptr.vmem [resolvable:$true] %s171_s29 }
  0x10   : > { %p998_p11 = scmp.ge.s32.totalorder %s1592_s17, 2  ;;  %s1595_s30 = smov 64  }
  0x11   : > { %p1374_p9 = pneg %p1678_p8  ;;  %s1596_s4 = smov 4  }
  0x12   : > { %s39_s5 = sadd.s32 1, %s1588_s16  ;;  %s48_s6 = sadd.s32 1, %s1580_s14 }
  0x13   : > { %p1375_p10 = pnand %p1374_p9, %p1655_p1  ;;  %p41_p12 = scmp.ge.s32.totalorder %s39_s5, 2 }
  0x14   : > { %s169_s26 = sshll.u32 %s1902_s1, 4  ;;  %p55_p13 = scmp.ne.s32.totalorder %s1580_s14, %s1576_s13  ;;  %s170_s26 = int_to_ptr.hbm [resolvable:$true] %s169_s26 }
  0x15   : > { %1377 = dma.hbm_to_vmem [thread:$0]  (!%p1375_p10), %s170_s26, 2048, %s172_s29, [#allocation6], %s1595_s30, %s1595_s30, %s1596_s4  }
  0x16   : > { %p56_p0 = scmp.eq.s32.totalorder %s1592_s17, 0  ;;  %s1912_s5 = smov (%p41_p12, %s39_s5), 0 }
  0x17   : > { %p1700_p5 = por %p1659_p2, %p55_p13  ;;  %s43_s9 = ssub.s32 %s1588_s16, %s1912_s5 }
  0x18   : > { %p1694_p3 = por %p56_p0, %p55_p13  ;;  %p1387_p7 = scmp.lt.s32.totalorder %s1592_s17, 2 }
  0x19   : > { %p46_p9 = scmp.eq.s32.totalorder %s43_s9, 0  ;;  %s191_s10 = sand.u32 1, %s1580_s14  }
  0x1a   : > { %s999_s11 = sshll.u32 %s191_s10, 8  ;;  %s1205_s19 = sshll.u32 %s1588_s16, 8 }
  0x1b   : > { %s1709_s18 = scalar_select %p46_p9, %s1580_s14, %s48_s6  }
  0x1c   : > { %s203_s26 = scalar_lea.hbm %s1893_s0, %s1205_s19  ;;  %s195_s28 = scalar_lea.vmem [#allocation2], %s999_s11 }
  0x1d   : > { %s206_s29 = sshll.u32 %s195_s28, 4  ;;  %s204_s21 = sshll.u32 %s203_s26, 4  ;;  %s207_s29 = int_to_ptr.vmem [resolvable:$true] %s206_s29  ;;  %s205_s21 = int_to_ptr.hbm [resolvable:$true] %s204_s21 }
  0x1e   : > { %p1379_p2 = pnand %p1387_p7, %p1694_p3  ;;  %s192_s30 = scalar_lea.sflag [#allocation3], %s191_s10 }
  0x1f   : > { %s1597_s4 = smov 128   ;;  %s1598_s1 = smov 8  }
  0x20   : > { %1381 = dma.hbm_to_vmem [thread:$0]  (!%p1379_p2), %s205_s21, 4096, %s207_s29, %s192_s30, %s1597_s4, %s1597_s4, %s1598_s1  }
  0x21   : > { %218 = sbr.rel (%p1678_p8) target bundleno = 337 (0x151), region = 32  ;;  %s1720_s6 = sand.u32 (!%p1678_p8), 1, %s1576_s13  }
  0x22   : > { %s1004_s9 = sshll.u32 (!%p1678_p8), %s1720_s6, 8  ;;  %s221_s11 = scalar_lea.sflag (!%p1678_p8), [#allocation3], %s1720_s6 }
  0x23   : > { %s1724_s19 = scalar_lea.vmem (!%p1678_p8), [#allocation2], %s1004_s9 }
  0x26   : > { %1559 = dma.done.wait (%p1665_p4), %s221_s11, 4096  }
  0x27   : > { %1561 = vsyncadd (%p1665_p4), %s221_s11, 4294963200 }
  0x28   : > { %1563 = dma.done.wait (%p1655_p1), [#allocation6], 2048  }
  0x29   : > { %1565 = vsyncadd (%p1655_p1), [#allocation6], 4294965248  ;;  %v1245_v0 = vld [vmem:[#allocation5 + $0x38] sm:$0xff]  ;;  %v1244_v2 = vld [vmem:[#allocation5 + $0x30] sm:$0xff]  ;;  %s1006_s22 = sshll.u32 %s1720_s6, 7  ;;  %s1254_s7 = sshll.u32 %s1584_s15, 7 }
  0x2a   : > { %v1253_v1 = vld [vmem:[#allocation5 + $0x78] sm:$0xff]  ;;  %587 = vmatpush.bf16.msra.mxu0 %v1245_v0  ;;  %1350 = vmatpush.bf16.msra.mxu2 %v1245_v0  ;;  %v1252_v3 = vld [vmem:[#allocation5 + $0x70] sm:$0xff]  ;;  %v1243_v4 = vld [vmem:[#allocation5 + $0x28] sm:$0xff]  ;;  %s1808_s27 = scalar_lea.vmem [#allocation7], %s1006_s22  ;;  %s874_s25 = scalar_lea.hbm %s1896_s3, %s1254_s7 }
  0x2b   : > { %676 = vmatpush.bf16.msra.mxu1 %v1253_v1  ;;  %1358 = vmatpush.bf16.msra.mxu3 %v1253_v1  ;;  %v1251_v5 = vld [vmem:[#allocation5 + $0x68] sm:$0xff]  ;;  %v1242_v6 = vld [vmem:[#allocation5 + $0x20] sm:$0xff]  ;;  %v1241_v8 = vld [vmem:[#allocation5 + $0x18] sm:$0xff]  ;;  %s875_s26 = sshll.u32 %s1808_s27, 4  ;;  %s877_s28 = sshll.u32 %s874_s25, 4  ;;  %s876_s26 = int_to_ptr.vmem [resolvable:$true] %s875_s26  ;;  %s878_s28 = int_to_ptr.hbm [resolvable:$true] %s877_s28 }
  0x2c   : > { %v1250_v7 = vld [vmem:[#allocation5 + $0x60] sm:$0xff]  ;;  %v1249_v9 = vld [vmem:[#allocation5 + $0x58] sm:$0xff]  ;;  %v1240_v10 = vld [vmem:[#allocation5 + $0x10] sm:$0xff]  ;;  %s862_s15 = scalar_lea.sflag [#allocation4], %s1720_s6  ;;  %s1520_s29 = sshra.s32 %s878_s28, 4  ;;  %s1521_s29 = int_to_ptr.hbm [resolvable:$true] %s1520_s29 }
  0x2d   : > { %v1248_v11 = vld [vmem:[#allocation5 + $0x50] sm:$0xff]  ;;  %v1239_v12 = vld [vmem:[#allocation5 + $0x8] sm:$0xff]  ;;  %v1238_v14 = vld [vmem:[#allocation5] sm:$0xff]  ;;  %s1522_s21 = scalar_lea.hbm %s1521_s29, 128  ;;  %s1526_s9 = scalar_lea.hbm %s1896_s3, 256 }
  0x2e   : > { %588 = vmatpush.bf16.msra.mxu0 %v1244_v2  ;;  %1351 = vmatpush.bf16.msra.mxu2 %v1244_v2  ;;  %v1247_v13 = vld [vmem:[#allocation5 + $0x48] sm:$0xff]  ;;  %v1246_v15 = vld [vmem:[#allocation5 + $0x40] sm:$0xff]  ;;  %v1017_v28 = vld [vmem:[%s1724_s19 + $0x10] sm:$0xf]  ;;  %p1523_p1 = scmp.ne.s32.totalorder %s1521_s29, %s1522_s21  ;;  %p1527_p10 = scmp.lt.s32.totalorder %s1521_s29, %s1896_s3 }
  0x2f   : > { %677 = vmatpush.bf16.msra.mxu1 %v1252_v3  ;;  %1359 = vmatpush.bf16.msra.mxu3 %v1252_v3  ;;  %v1009_v16 = vld [vmem:[%s1724_s19] sm:$0xf]  ;;  %v1207_v17 = vld [vmem:[%s1724_s19 + $0x4] sm:$0xf0]  ;;  %v1206_v20 = vld [vmem:[%s1724_s19 + $0x4] sm:$0xf]  ;;  %p1528_p12 = scmp.lt.s32.totalorder %s1526_s9, %s1522_s21 }
  0x30   : > { %v1073_v18 = vld [vmem:[%s1724_s19 + $0x80] sm:$0xf]  ;;  %v1223_v19 = vld [vmem:[%s1724_s19 + $0x84] sm:$0xf0]  ;;  %v1011_v21 = vld [vmem:[%s1724_s19 + $0x8] sm:$0xf0]  ;;  %v1010_v24 = vor.u32 %v1207_v17, %v1009_v16  ;;  %p1524_p4 = pnand %p1523_p1, %p1700_p5 }
  0x31   : > { %v1222_v22 = vld [vmem:[%s1724_s19 + $0x84] sm:$0xf]  ;;  %v1075_v23 = vld [vmem:[%s1724_s19 + $0x88] sm:$0xf0]  ;;  %v1074_v25 = vor.u32 %v1223_v19, %v1073_v18  ;;  %v1014_v26 = vor.u32 %v1206_v20, %v1011_v21  ;;  %v1209_v29 = vld [vmem:[%s1724_s19 + $0x14] sm:$0xf0]  ;;  %p1529_p13 = por %p1528_p12, %p1527_p10 }
  0x32   : > { %589 = vmatpush.bf16.msra.mxu0 %v1243_v4  ;;  %1352 = vmatpush.bf16.msra.mxu2 %v1243_v4  ;;  %v1078_v27 = vor.u32 %v1222_v22, %v1075_v23  ;;  %v1081_v30 = vld [vmem:[%s1724_s19 + $0x90] sm:$0xf]  ;;  %v1225_v31 = vld [vmem:[%s1724_s19 + $0x94] sm:$0xf0]  ;;  %v1208_v32 = vld [vmem:[%s1724_s19 + $0x14] sm:$0xf]  ;;  %v1018_v36 = vor.u32 %v1209_v29, %v1017_v28  ;;  %p1525_p8 = pneg %p1524_p4 }
  0x33   : > { %678 = vmatpush.bf16.msra.mxu1 %v1251_v5  ;;  %1360 = vmatpush.bf16.msra.mxu3 %v1251_v5  ;;  %v1019_v33 = vld [vmem:[%s1724_s19 + $0x18] sm:$0xf0]  ;;  %v1224_v34 = vld [vmem:[%s1724_s19 + $0x94] sm:$0xf]  ;;  %v1082_v37 = vor.u32 %v1225_v31, %v1081_v30  ;;  %v1025_v40 = vld [vmem:[%s1724_s19 + $0x20] sm:$0xf] }
  0x34   : > { %v1083_v35 = vld [vmem:[%s1724_s19 + $0x98] sm:$0xf0]  ;;  %v1022_v38 = vor.u32 %v1208_v32, %v1019_v33  ;;  %v1211_v41 = vld [vmem:[%s1724_s19 + $0x24] sm:$0xf0]  ;;  %v1089_v42 = vld [vmem:[%s1724_s19 + $0xa0] sm:$0xf]  ;;  %p1530_p0 = pnand %p1529_p13, %p1525_p8 }
  0x35   : > { %v1086_v39 = vor.u32 %v1224_v34, %v1083_v35  ;;  %v1227_v43 = vld [vmem:[%s1724_s19 + $0xa4] sm:$0xf0]  ;;  %v1210_v44 = vld [vmem:[%s1724_s19 + $0x24] sm:$0xf]  ;;  %v1027_v45 = vld [vmem:[%s1724_s19 + $0x28] sm:$0xf0]  ;;  %v1026_v48 = vor.u32 %v1211_v41, %v1025_v40 }
  0x36   : > { %590 = vmatpush.bf16.msra.mxu0 %v1242_v6  ;;  %1353 = vmatpush.bf16.msra.mxu2 %v1242_v6  ;;  %v1226_v46 = vld [vmem:[%s1724_s19 + $0xa4] sm:$0xf]  ;;  %v1091_v47 = vld [vmem:[%s1724_s19 + $0xa8] sm:$0xf0]  ;;  %v1090_v49 = vor.u32 %v1227_v43, %v1089_v42  ;;  %v1030_v50 = vor.u32 %v1210_v44, %v1027_v45  ;;  %v1033_v52 = vld [vmem:[%s1724_s19 + $0x30] sm:$0xf] }
  0x37   : > { %679 = vmatpush.bf16.msra.mxu1 %v1250_v7  ;;  %1361 = vmatpush.bf16.msra.mxu3 %v1250_v7  ;;  %v1094_v51 = vor.u32 %v1226_v46, %v1091_v47  ;;  %v1213_v53 = vld [vmem:[%s1724_s19 + $0x34] sm:$0xf0]  ;;  %v1097_v54 = vld [vmem:[%s1724_s19 + $0xb0] sm:$0xf]  ;;  %v1212_v56 = vld [vmem:[%s1724_s19 + $0x34] sm:$0xf] }
  0x38   : > { %v1229_v55 = vld [vmem:[%s1724_s19 + $0xb4] sm:$0xf0]  ;;  %v1035_v57 = vld [vmem:[%s1724_s19 + $0x38] sm:$0xf0]  ;;  %v1228_v58 = vld [vmem:[%s1724_s19 + $0xb4] sm:$0xf]  ;;  %v1034_v60 = vor.u32 %v1213_v53, %v1033_v52 }
  0x39   : > { %v1099_v59 = vld [vmem:[%s1724_s19 + $0xb8] sm:$0xf0]  ;;  %v1098_v61 = vor.u32 %v1229_v55, %v1097_v54  ;;  %v1038_v62 = vor.u32 %v1212_v56, %v1035_v57  ;;  %v1041_v0 = vld [vmem:[%s1724_s19 + $0x40] sm:$0xf]  ;;  %v1215_v1 = vld [vmem:[%s1724_s19 + $0x44] sm:$0xf0] }
  0x3a   : > { %591 = vmatpush.bf16.msra.mxu0 %v1241_v8  ;;  %1354 = vmatpush.bf16.msra.mxu2 %v1241_v8  ;;  %v1102_v63 = vor.u32 %v1228_v58, %v1099_v59  ;;  %v1105_v2 = vld [vmem:[%s1724_s19 + $0xc0] sm:$0xf]  ;;  %v1231_v3 = vld [vmem:[%s1724_s19 + $0xc4] sm:$0xf0]  ;;  %v1214_v4 = vld [vmem:[%s1724_s19 + $0x44] sm:$0xf]  ;;  %v1042_v8 = vor.u32 %v1215_v1, %v1041_v0 }
  0x3b   : > { %680 = vmatpush.bf16.msra.mxu1 %v1249_v9  ;;  %1362 = vmatpush.bf16.msra.mxu3 %v1249_v9  ;;  %v1043_v5 = vld [vmem:[%s1724_s19 + $0x48] sm:$0xf0]  ;;  %v1230_v6 = vld [vmem:[%s1724_s19 + $0xc4] sm:$0xf]  ;;  %v1106_v9 = vor.u32 %v1231_v3, %v1105_v2  ;;  %v1216_v16 = vld [vmem:[%s1724_s19 + $0x54] sm:$0xf] }
  0x3c   : > { %v1107_v7 = vld [vmem:[%s1724_s19 + $0xc8] sm:$0xf0]  ;;  %v1051_v17 = vld [vmem:[%s1724_s19 + $0x58] sm:$0xf0]  ;;  %v1232_v18 = vld [vmem:[%s1724_s19 + $0xd4] sm:$0xf] }
  0x3d   : > { %v1115_v19 = vld [vmem:[%s1724_s19 + $0xd8] sm:$0xf0]  ;;  %v1054_v22 = vor.u32 %v1216_v16, %v1051_v17  ;;  %v1218_v28 = vld [vmem:[%s1724_s19 + $0x64] sm:$0xf]  ;;  %v1059_v29 = vld [vmem:[%s1724_s19 + $0x68] sm:$0xf0] }
  0x3e   : > { %592 = vmatpush.bf16.msra.mxu0 %v1240_v10  ;;  %1355 = vmatpush.bf16.msra.mxu2 %v1240_v10  ;;  %v1046_v10 = vor.u32 %v1214_v4, %v1043_v5  ;;  %v1118_v23 = vor.u32 %v1232_v18, %v1115_v19  ;;  %v1234_v30 = vld [vmem:[%s1724_s19 + $0xe4] sm:$0xf]  ;;  %v1123_v31 = vld [vmem:[%s1724_s19 + $0xe8] sm:$0xf0]  ;;  %v1062_v34 = vor.u32 %v1218_v28, %v1059_v29  ;;  %v1220_v40 = vld [vmem:[%s1724_s19 + $0x74] sm:$0xf] }
  0x3f   : > { %681 = vmatpush.bf16.msra.mxu1 %v1248_v11  ;;  %1363 = vmatpush.bf16.msra.mxu3 %v1248_v11  ;;  %v1110_v11 = vor.u32 %v1230_v6, %v1107_v7  ;;  %v1126_v35 = vor.u32 %v1234_v30, %v1123_v31  ;;  %v1067_v41 = vld [vmem:[%s1724_s19 + $0x78] sm:$0xf0]  ;;  %v1236_v42 = vld [vmem:[%s1724_s19 + $0xf4] sm:$0xf] }
  0x40   : > { %v1131_v43 = vld [vmem:[%s1724_s19 + $0xf8] sm:$0xf0]  ;;  %v1070_v46 = vor.u32 %v1220_v40, %v1067_v41 }
  0x41   : > { %v1134_v47 = vor.u32 %v1236_v42, %v1131_v43 }
  0x42   : > { %593 = vmatpush.bf16.msra.mxu0 %v1239_v12  ;;  %1356 = vmatpush.bf16.msra.mxu2 %v1239_v12  ;;  %v1049_v12 = vld [vmem:[%s1724_s19 + $0x50] sm:$0xf] }
  0x43   : > { %682 = vmatpush.bf16.msra.mxu1 %v1247_v13  ;;  %1364 = vmatpush.bf16.msra.mxu3 %v1247_v13  ;;  %v1217_v13 = vld [vmem:[%s1724_s19 + $0x54] sm:$0xf0] }
  0x44   : > { %v1050_v20 = vor.u32 %v1217_v13, %v1049_v12 }
  0x46   : > { %594 = vmatpush.bf16.msra.mxu0 %v1238_v14  ;;  %1357 = vmatpush.bf16.msra.mxu2 %v1238_v14  ;;  %v1113_v14 = vld [vmem:[%s1724_s19 + $0xd0] sm:$0xf] }
  0x47   : > { %683 = vmatpush.bf16.msra.mxu1 %v1246_v15  ;;  %1365 = vmatpush.bf16.msra.mxu3 %v1246_v15  ;;  %v1233_v15 = vld [vmem:[%s1724_s19 + $0xd4] sm:$0xf0] }
  0x48   : > { %v1114_v21 = vor.u32 %v1233_v15, %v1113_v14 }
  0x49   : > { %595 = vmatmul.bf16.vlgmr.msra.gmra.mxu0 %v1010_v24  ;;  %635 = vmatmul.bf16.vlgmr.msra.gmra.mxu2 %v1074_v25  ;;  %v1057_v24 = vld [vmem:[%s1724_s19 + $0x60] sm:$0xf]  ;;  %v1219_v25 = vld [vmem:[%s1724_s19 + $0x64] sm:$0xf0] }
  0x4a   : > { %684 = vmatmul.bf16.vlgmr.msra.gmra.mxu1 %v1014_v26  ;;  %724 = vmatmul.bf16.vlgmr.msra.gmra.mxu3 %v1078_v27  ;;  %v1121_v26 = vld [vmem:[%s1724_s19 + $0xe0] sm:$0xf]  ;;  %v1235_v27 = vld [vmem:[%s1724_s19 + $0xe4] sm:$0xf0]  ;;  %v1058_v32 = vor.u32 %v1219_v25, %v1057_v24 }
  0x4b   : > { %v1122_v33 = vor.u32 %v1235_v27, %v1121_v26 }
  0x59   : > { %600 = vmatmul.bf16.gmra.mxu0 %v1018_v36  ;;  %640 = vmatmul.bf16.gmra.mxu2 %v1082_v37  ;;  %v1065_v36 = vld [vmem:[%s1724_s19 + $0x70] sm:$0xf]  ;;  %v1221_v37 = vld [vmem:[%s1724_s19 + $0x74] sm:$0xf0] }
  0x5a   : > { %689 = vmatmul.bf16.gmra.mxu1 %v1022_v38  ;;  %729 = vmatmul.bf16.gmra.mxu3 %v1086_v39  ;;  %v1129_v38 = vld [vmem:[%s1724_s19 + $0xf0] sm:$0xf]  ;;  %v1237_v39 = vld [vmem:[%s1724_s19 + $0xf4] sm:$0xf0]  ;;  %v1066_v44 = vor.u32 %v1221_v37, %v1065_v36 }
  0x5b   : > { %v1130_v45 = vor.u32 %v1237_v39, %v1129_v38 }
  0x69   : > { %605 = vmatmul.bf16.gmra.mxu0 %v1026_v48  ;;  %645 = vmatmul.bf16.gmra.mxu2 %v1090_v49  ;;  %v1801_v49 = vld [vmem:[%s1895_s2] ss:$0 sm:$0xff] }
  0x6a   : > { %694 = vmatmul.bf16.gmra.mxu1 %v1030_v50  ;;  %734 = vmatmul.bf16.gmra.mxu3 %v1094_v51 }
  0x79   : > { %610 = vmatmul.bf16.gmra.mxu0 %v1034_v60  ;;  %650 = vmatmul.bf16.gmra.mxu2 %v1098_v61 }
  0x7a   : > { %699 = vmatmul.bf16.gmra.mxu1 %v1038_v62  ;;  %739 = vmatmul.bf16.gmra.mxu3 %v1102_v63 }
  0x89   : > { %615 = vmatmul.bf16.gmra.mxu0 %v1042_v8  ;;  %655 = vmatmul.bf16.gmra.mxu2 %v1106_v9 }
  0x8a   : > { %704 = vmatmul.bf16.gmra.mxu1 %v1046_v10  ;;  %744 = vmatmul.bf16.gmra.mxu3 %v1110_v11 }
  0x99   : > { %620 = vmatmul.bf16.gmra.mxu0 %v1050_v20  ;;  %660 = vmatmul.bf16.gmra.mxu2 %v1114_v21 }
  0x9a   : > { %709 = vmatmul.bf16.gmra.mxu1 %v1054_v22  ;;  %749 = vmatmul.bf16.gmra.mxu3 %v1118_v23 }
  0xa9   : > { %625 = vmatmul.bf16.gmra.mxu0 %v1058_v32  ;;  %665 = vmatmul.bf16.gmra.mxu2 %v1122_v33 }
  0xaa   : > { %714 = vmatmul.bf16.gmra.mxu1 %v1062_v34  ;;  %754 = vmatmul.bf16.gmra.mxu3 %v1126_v35 }
  0xb9   : > { %630 = vmatmul.bf16.gmra.mxu0 %v1066_v44  ;;  %670 = vmatmul.bf16.gmra.mxu2 %v1130_v45 }
  0xba   : > { %719 = vmatmul.bf16.gmra.mxu1 %v1070_v46  ;;  %759 = vmatmul.bf16.gmra.mxu3 %v1134_v47 }
  0xc6   : > { %v596_v48 = vpop.f32.mrf.mxu0 }
  0xc7   : > { %v685_v50 = vpop.f32.mrf.mxu1  ;;  %v597_v51 = vadd.f32 %v1801_v49, %v596_v48 }
  0xc9   : > { %v686_v55 = vadd.f32 %v685_v50, %v597_v51 }
  0xcb   : > { %v765_v60 = vmax.f32 %v686_v55, 0.0 }
  0xcc   : > { %v636_v52 = vpop.f32.mrf.mxu2 }
  0xcd   : > { %v725_v53 = vpop.f32.mrf.mxu3  ;;  %v637_v58 = vadd.f32 %v1801_v49, %v636_v52 }
  0xce   : > { %v598_v54 = vpop.f32.mrf.mxu0 }
  0xcf   : > { %v599_v56 = vadd.f32 %v1801_v49, %v598_v54  ;;  %v687_v57 = vpop.f32.mrf.mxu1  ;;  %v726_v63 = vadd.f32 %v725_v53, %v637_v58 }
  0xd1   : > { %v688_v59 = vadd.f32 %v687_v57, %v599_v56  ;;  %v781_v6 = vmax.f32 %v726_v63, 0.0 }
  0xd3   : > { %v766_v61 = vmax.f32 %v688_v59, 0.0 }
  0xd4   : > { %v638_v62 = vpop.f32.mrf.mxu2 }
  0xd5   : > { %v1258_v0 = vpack.c.bf16 %v766_v61, %v765_v60  ;;  %v639_v1 = vadd.f32 %v1801_v49, %v638_v62  ;;  %v727_v2 = vpop.f32.mrf.mxu3 }
  0xd6   : > { %v601_v3 = vpop.f32.mrf.mxu0 }
  0xd7   : > { %1259 = vst [vmem:[%s1808_s27] sm:$0xff] %v1258_v0   ;;  %v728_v4 = vadd.f32 %v727_v2, %v639_v1  ;;  %v690_v5 = vpop.f32.mrf.mxu1  ;;  %v602_v9 = vadd.f32 %v1801_v49, %v601_v3 }
  0xd9   : > { %v782_v7 = vmax.f32 %v728_v4, 0.0  ;;  %v691_v13 = vadd.f32 %v690_v5, %v602_v9 }
  0xdb   : > { %v1298_v8 = vpack.c.bf16 %v782_v7, %v781_v6  ;;  %v767_v18 = vmax.f32 %v691_v13, 0.0 }
  0xdc   : > { %v641_v10 = vpop.f32.mrf.mxu2 }
  0xdd   : > { %1342 = vst [vmem:[%s1808_s27 + $0x40] sm:$0xff] %v1298_v8   ;;  %v730_v11 = vpop.f32.mrf.mxu3  ;;  %v642_v16 = vadd.f32 %v1801_v49, %v641_v10 }
  0xde   : > { %v603_v12 = vpop.f32.mrf.mxu0 }
  0xdf   : > { %v604_v14 = vadd.f32 %v1801_v49, %v603_v12  ;;  %v692_v15 = vpop.f32.mrf.mxu1  ;;  %v731_v21 = vadd.f32 %v730_v11, %v642_v16 }
  0xe1   : > { %v693_v17 = vadd.f32 %v692_v15, %v604_v14  ;;  %v783_v28 = vmax.f32 %v731_v21, 0.0 }
  0xe3   : > { %v768_v19 = vmax.f32 %v693_v17, 0.0 }
  0xe4   : > { %v643_v20 = vpop.f32.mrf.mxu2 }
  0xe5   : > { %v1263_v22 = vpack.c.bf16 %v768_v19, %v767_v18  ;;  %v644_v23 = vadd.f32 %v1801_v49, %v643_v20  ;;  %v732_v24 = vpop.f32.mrf.mxu3 }
  0xe6   : > { %v606_v25 = vpop.f32.mrf.mxu0 }
  0xe7   : > { %1335 = vst [vmem:[%s1808_s27 + $0x8] sm:$0xff] %v1263_v22   ;;  %v733_v26 = vadd.f32 %v732_v24, %v644_v23  ;;  %v695_v27 = vpop.f32.mrf.mxu1  ;;  %v607_v31 = vadd.f32 %v1801_v49, %v606_v25 }
  0xe9   : > { %v784_v29 = vmax.f32 %v733_v26, 0.0  ;;  %v696_v35 = vadd.f32 %v695_v27, %v607_v31 }
  0xeb   : > { %v1303_v30 = vpack.c.bf16 %v784_v29, %v783_v28  ;;  %v769_v40 = vmax.f32 %v696_v35, 0.0 }
  0xec   : > { %v646_v32 = vpop.f32.mrf.mxu2 }
  0xed   : > { %1343 = vst [vmem:[%s1808_s27 + $0x48] sm:$0xff] %v1303_v30   ;;  %v735_v33 = vpop.f32.mrf.mxu3  ;;  %v647_v38 = vadd.f32 %v1801_v49, %v646_v32 }
  0xee   : > { %v608_v34 = vpop.f32.mrf.mxu0 }
  0xef   : > { %v609_v36 = vadd.f32 %v1801_v49, %v608_v34  ;;  %v697_v37 = vpop.f32.mrf.mxu1  ;;  %v736_v43 = vadd.f32 %v735_v33, %v647_v38 }
  0xf1   : > { %v698_v39 = vadd.f32 %v697_v37, %v609_v36  ;;  %v785_v51 = vmax.f32 %v736_v43, 0.0 }
  0xf3   : > { %v770_v41 = vmax.f32 %v698_v39, 0.0 }
  0xf4   : > { %v648_v42 = vpop.f32.mrf.mxu2 }
  0xf5   : > { %v1268_v44 = vpack.c.bf16 %v770_v41, %v769_v40  ;;  %v649_v45 = vadd.f32 %v1801_v49, %v648_v42  ;;  %v737_v46 = vpop.f32.mrf.mxu3 }
  0xf6   : > { %v611_v47 = vpop.f32.mrf.mxu0 }
  0xf7   : > { %1336 = vst [vmem:[%s1808_s27 + $0x10] sm:$0xff] %v1268_v44   ;;  %v738_v48 = vadd.f32 %v737_v46, %v649_v45  ;;  %v700_v50 = vpop.f32.mrf.mxu1  ;;  %v612_v54 = vadd.f32 %v1801_v49, %v611_v47 }
  0xf9   : > { %v786_v52 = vmax.f32 %v738_v48, 0.0  ;;  %v701_v58 = vadd.f32 %v700_v50, %v612_v54 }
  0xfb   : > { %v1308_v53 = vpack.c.bf16 %v786_v52, %v785_v51  ;;  %v771_v63 = vmax.f32 %v701_v58, 0.0 }
  0xfc   : > { %v651_v55 = vpop.f32.mrf.mxu2 }
  0xfd   : > { %1344 = vst [vmem:[%s1808_s27 + $0x50] sm:$0xff] %v1308_v53   ;;  %v740_v56 = vpop.f32.mrf.mxu3  ;;  %v652_v61 = vadd.f32 %v1801_v49, %v651_v55 }
  0xfe   : > { %v613_v57 = vpop.f32.mrf.mxu0 }
  0xff   : > { %v614_v59 = vadd.f32 %v1801_v49, %v613_v57  ;;  %v702_v60 = vpop.f32.mrf.mxu1  ;;  %v741_v2 = vadd.f32 %v740_v56, %v652_v61 }
 0x101   : > { %v703_v62 = vadd.f32 %v702_v60, %v614_v59  ;;  %v787_v9 = vmax.f32 %v741_v2, 0.0 }
 0x103   : > { %v772_v0 = vmax.f32 %v703_v62, 0.0 }
 0x104   : > { %v653_v1 = vpop.f32.mrf.mxu2 }
 0x105   : > { %v1273_v3 = vpack.c.bf16 %v772_v0, %v771_v63  ;;  %v654_v4 = vadd.f32 %v1801_v49, %v653_v1  ;;  %v742_v5 = vpop.f32.mrf.mxu3 }
 0x106   : > { %v616_v6 = vpop.f32.mrf.mxu0 }
 0x107   : > { %1337 = vst [vmem:[%s1808_s27 + $0x18] sm:$0xff] %v1273_v3   ;;  %v743_v7 = vadd.f32 %v742_v5, %v654_v4  ;;  %v705_v8 = vpop.f32.mrf.mxu1  ;;  %v617_v12 = vadd.f32 %v1801_v49, %v616_v6 }
 0x109   : > { %v788_v10 = vmax.f32 %v743_v7, 0.0  ;;  %v706_v16 = vadd.f32 %v705_v8, %v617_v12 }
 0x10b   : > { %v1313_v11 = vpack.c.bf16 %v788_v10, %v787_v9  ;;  %v773_v21 = vmax.f32 %v706_v16, 0.0 }
 0x10c   : > { %v656_v13 = vpop.f32.mrf.mxu2 }
 0x10d   : > { %1345 = vst [vmem:[%s1808_s27 + $0x58] sm:$0xff] %v1313_v11   ;;  %v745_v14 = vpop.f32.mrf.mxu3  ;;  %v657_v19 = vadd.f32 %v1801_v49, %v656_v13 }
 0x10e   : > { %v618_v15 = vpop.f32.mrf.mxu0 }
 0x10f   : > { %v619_v17 = vadd.f32 %v1801_v49, %v618_v15  ;;  %v707_v18 = vpop.f32.mrf.mxu1  ;;  %v746_v24 = vadd.f32 %v745_v14, %v657_v19 }
 0x111   : > { %v708_v20 = vadd.f32 %v707_v18, %v619_v17  ;;  %v789_v31 = vmax.f32 %v746_v24, 0.0 }
 0x113   : > { %v774_v22 = vmax.f32 %v708_v20, 0.0 }
 0x114   : > { %v658_v23 = vpop.f32.mrf.mxu2 }
 0x115   : > { %v1278_v25 = vpack.c.bf16 %v774_v22, %v773_v21  ;;  %v659_v26 = vadd.f32 %v1801_v49, %v658_v23  ;;  %v747_v27 = vpop.f32.mrf.mxu3 }
 0x116   : > { %v621_v28 = vpop.f32.mrf.mxu0 }
 0x117   : > { %1338 = vst [vmem:[%s1808_s27 + $0x20] sm:$0xff] %v1278_v25   ;;  %v748_v29 = vadd.f32 %v747_v27, %v659_v26  ;;  %v710_v30 = vpop.f32.mrf.mxu1  ;;  %v622_v34 = vadd.f32 %v1801_v49, %v621_v28 }
 0x119   : > { %v790_v32 = vmax.f32 %v748_v29, 0.0  ;;  %v711_v38 = vadd.f32 %v710_v30, %v622_v34 }
 0x11b   : > { %v1318_v33 = vpack.c.bf16 %v790_v32, %v789_v31  ;;  %v775_v43 = vmax.f32 %v711_v38, 0.0 }
 0x11c   : > { %v661_v35 = vpop.f32.mrf.mxu2 }
 0x11d   : > { %1346 = vst [vmem:[%s1808_s27 + $0x60] sm:$0xff] %v1318_v33   ;;  %v750_v36 = vpop.f32.mrf.mxu3  ;;  %v662_v41 = vadd.f32 %v1801_v49, %v661_v35 }
 0x11e   : > { %v623_v37 = vpop.f32.mrf.mxu0 }
 0x11f   : > { %v624_v39 = vadd.f32 %v1801_v49, %v623_v37  ;;  %v712_v40 = vpop.f32.mrf.mxu1  ;;  %v751_v46 = vadd.f32 %v750_v36, %v662_v41 }
 0x121   : > { %v713_v42 = vadd.f32 %v712_v40, %v624_v39  ;;  %v791_v54 = vmax.f32 %v751_v46, 0.0 }
 0x123   : > { %v776_v44 = vmax.f32 %v713_v42, 0.0 }
 0x124   : > { %v663_v45 = vpop.f32.mrf.mxu2 }
 0x125   : > { %v1283_v47 = vpack.c.bf16 %v776_v44, %v775_v43  ;;  %v664_v48 = vadd.f32 %v1801_v49, %v663_v45  ;;  %v752_v50 = vpop.f32.mrf.mxu3 }
 0x126   : > { %v626_v51 = vpop.f32.mrf.mxu0 }
 0x127   : > { %1339 = vst [vmem:[%s1808_s27 + $0x28] sm:$0xff] %v1283_v47   ;;  %v753_v52 = vadd.f32 %v752_v50, %v664_v48  ;;  %v715_v53 = vpop.f32.mrf.mxu1  ;;  %v627_v57 = vadd.f32 %v1801_v49, %v626_v51 }
 0x129   : > { %v792_v55 = vmax.f32 %v753_v52, 0.0  ;;  %v716_v61 = vadd.f32 %v715_v53, %v627_v57 }
 0x12b   : > { %v1323_v56 = vpack.c.bf16 %v792_v55, %v791_v54  ;;  %v777_v2 = vmax.f32 %v716_v61, 0.0 }
 0x12c   : > { %v666_v58 = vpop.f32.mrf.mxu2 }
 0x12d   : > { %1347 = vst [vmem:[%s1808_s27 + $0x68] sm:$0xff] %v1323_v56   ;;  %v755_v59 = vpop.f32.mrf.mxu3  ;;  %v667_v0 = vadd.f32 %v1801_v49, %v666_v58 }
 0x12e   : > { %v628_v60 = vpop.f32.mrf.mxu0 }
 0x12f   : > { %v629_v62 = vadd.f32 %v1801_v49, %v628_v60  ;;  %v717_v63 = vpop.f32.mrf.mxu1  ;;  %v756_v5 = vadd.f32 %v755_v59, %v667_v0 }
 0x131   : > { %v718_v1 = vadd.f32 %v717_v63, %v629_v62  ;;  %v793_v12 = vmax.f32 %v756_v5, 0.0 }
 0x133   : > { %v778_v3 = vmax.f32 %v718_v1, 0.0 }
 0x134   : > { %v668_v4 = vpop.f32.mrf.mxu2 }
 0x135   : > { %v1288_v6 = vpack.c.bf16 %v778_v3, %v777_v2  ;;  %v669_v7 = vadd.f32 %v1801_v49, %v668_v4  ;;  %v757_v8 = vpop.f32.mrf.mxu3 }
 0x136   : > { %v631_v9 = vpop.f32.mrf.mxu0 }
 0x137   : > { %1340 = vst [vmem:[%s1808_s27 + $0x30] sm:$0xff] %v1288_v6   ;;  %v758_v10 = vadd.f32 %v757_v8, %v669_v7  ;;  %v720_v11 = vpop.f32.mrf.mxu1  ;;  %v632_v15 = vadd.f32 %v1801_v49, %v631_v9 }
 0x139   : > { %v794_v13 = vmax.f32 %v758_v10, 0.0  ;;  %v721_v19 = vadd.f32 %v720_v11, %v632_v15 }
 0x13b   : > { %v1328_v14 = vpack.c.bf16 %v794_v13, %v793_v12  ;;  %v779_v24 = vmax.f32 %v721_v19, 0.0 }
 0x13c   : > { %v671_v16 = vpop.f32.mrf.mxu2 }
 0x13d   : > { %1348 = vst [vmem:[%s1808_s27 + $0x70] sm:$0xff] %v1328_v14   ;;  %v760_v17 = vpop.f32.mrf.mxu3  ;;  %v672_v22 = vadd.f32 %v1801_v49, %v671_v16 }
 0x13e   : > { %v633_v18 = vpop.f32.mrf.mxu0 }
 0x13f   : > { %v634_v20 = vadd.f32 %v1801_v49, %v633_v18  ;;  %v722_v21 = vpop.f32.mrf.mxu1  ;;  %v761_v27 = vadd.f32 %v760_v17, %v672_v22 }
 0x141   : > { %v723_v23 = vadd.f32 %v722_v21, %v634_v20  ;;  %v795_v32 = vmax.f32 %v761_v27, 0.0 }
 0x143   : > { %v780_v25 = vmax.f32 %v723_v23, 0.0 }
 0x144   : > { %v673_v26 = vpop.f32.mrf.mxu2 }
 0x145   : > { %v1293_v28 = vpack.c.bf16 %v780_v25, %v779_v24  ;;  %v674_v29 = vadd.f32 %v1801_v49, %v673_v26  ;;  %v762_v30 = vpop.f32.mrf.mxu3 }
 0x147   : > { %1341 = vst [vmem:[%s1808_s27 + $0x38] sm:$0xff] %v1293_v28   ;;  %v763_v31 = vadd.f32 %v762_v30, %v674_v29 }
 0x149   : > { %v796_v33 = vmax.f32 %v763_v31, 0.0 }
 0x14b   : > { %v1333_v34 = vpack.c.bf16 %v796_v33, %v795_v32 }
 0x14d   : > { %1349 = vst [vmem:[%s1808_s27 + $0x78] sm:$0xff] %v1333_v34  }
 0x14e   : > { %1533 = shalt.err (!%p1530_p0)
}
 0x14f   : > { %s1599_s6 = smov 64   ;;  %s1600_s1 = smov 4  }
 0x150   : > { %1372 = dma.vmem_to_hbm [thread:$0]  (%p1700_p5), %s876_s26, 2048, %s878_s28, %s862_s15, %s1599_s6, %s1599_s6, %s1600_s1  }
 0x151 PF: > { %s892_s20 = sand.u32 1, %s1572_s12   ;;  %p1383_p3 = pnand %p998_p11, %p1670_p6 }
 0x152   : > { %s893_s22 = scalar_lea.sflag [#allocation4], %s892_s20 }
 0x153   : > { %p1384_p7 = pneg %p1383_p3 }
 0x155   : > { %1567 = dma.done.wait (%p1384_p7), %s893_s22, 2048  }
 0x156   : > { %1569 = vsyncadd (%p1384_p7), %s893_s22, 4294965248  ;;  %s20_s17 = sadd.s32 1, %s1592_s17   ;;  %s1906_s12 = smov %s1576_s13 }
 0x157   : > { %p17_p9 = scmp.ge.s32.totalorder %s20_s17, 4   ;;  %s1907_s13 = smov %s1580_s14 }
 0x158   : > { %s1908_s14 = smov %s1709_s18  ;;  %s1909_s15 = smov %s1588_s16 }
 0x159   : > { %s1910_s16 = smov %s1912_s5  ;;  %19 = sbr.rel (!%p17_p9) target bundleno = 9 (0x9), region = 85 }
 0x15e   :  { %899 = vsyncpa [#allocation3], 1 }
 0x15f   :  { %901 = vsyncpa [#allocation3 + $0x1], 1 }
 0x160   :  { %902 = vsyncpa [#allocation6], 1 }
 0x161   :  { %903 = vsyncpa [#allocation4], 1 }
 0x162   :  { %905 = vsyncpa [#allocation4 + $0x1], 1 }

</bundles_post_ra>
